<compile_context>
chip_gen: v7x
topology: tpu7x:2x2x1
jax: 0.10.0
libtpu: 0.0.40
codegen_flags: <defaults>
</compile_context>

<pallas_src>
import functools

import jax
import jax.numpy as jnp
from jax.experimental import pallas as pl
from jax.experimental.pallas import tpu as pltpu

# Problem sizes (small, consistent with the module).
B, C, H, W = 2, 4, 16, 16
NUM_CLASSES = 10

# TPU layout constants.
B_PAD = 8             # pad batch to a full sublane tile -> unmasked stores
NC_PAD = 128          # classes zero-padded to exactly one 128-lane tile
D = C * H * W         # 1024 contraction dim
HW = H * W            # 256 = 2 lane tiles -> lane-dense map store

# Confounder placeholder geometry (powers of two -> shifts/masks only).
PATCH = 4
N_X = W // PATCH      # 4 patch columns
N_Y = H // PATCH      # 4 patch rows
LOG2_W = 4            # W == 16
LOG2_NX = 2           # N_X == 4


# ---------------------------------------------------------------------------
# Fused kernel: preds = x_flat(bf16) @ W_pad(bf16) + b_pad   (MXU, f32 acc)
#               maps  = flattened per-sample confounder mask (VPU, free filler
#                       under the matmul's slack slots)
# ---------------------------------------------------------------------------
def _fused_kernel(x_ref, w_ref, b_ref, y_ref, preds_ref, maps_ref):
    # ---- wrapped "model": linear classifier on the MXU --------------------
    x_bf = x_ref[...].astype(jnp.bfloat16)
    preds_ref[...] = (
        jnp.dot(x_bf, w_ref[...], preferred_element_type=jnp.float32)
        + b_ref[...]
    )

    # ---- explainer branch --------------------------------------------------
    # x = zeros_like(x); x = superimpose_confounder(x, y); mean over C.
    # Every channel gets the identical unit patch, so the channel mean is just
    # the mask itself: write mask.astype(f32) directly, flattened over (H, W).
    idx = jax.lax.broadcasted_iota(jnp.int32, (B_PAD, HW), 1)
    rows = idx >> LOG2_W                  # idx // W   (W == 16)
    cols = idx & (W - 1)                  # idx %  W
    bidx = jax.lax.broadcasted_iota(jnp.int32, (B_PAD, HW), 0)

    # Broadcast the SMEM label scalars into a (B_PAD, HW) field (8 cheap
    # selects on the VPU; no VMEM DMA for 8 bytes of labels).
    lab = jnp.zeros((B_PAD, HW), jnp.int32)
    for i in range(B_PAD):
        lab = jnp.where(bidx == i, y_ref[i], lab)

    col0 = (lab & (N_X - 1)) * PATCH                   # (labels % n_x) * PATCH
    row0 = ((lab >> LOG2_NX) & (N_Y - 1)) * PATCH      # ((labels//n_x)%n_y)*PATCH
    mask = (
        (rows >= row0) & (rows < row0 + PATCH)
        & (cols >= col0) & (cols < col0 + PATCH)
    )
    maps_ref[...] = mask.astype(jnp.float32)           # lane-dense (8, 256) store


# ---------------------------------------------------------------------------
# One-time parameter preparation (hoisted out of the per-call forward).
# ---------------------------------------------------------------------------
def prepare_params(w, b):
    """Pad the linear head to a 128-lane tile and cast the weight to bf16."""
    w_pad = (
        jnp.zeros((D, NC_PAD), jnp.bfloat16)
        .at[:, :NUM_CLASSES]
        .set(w.astype(jnp.bfloat16))
    )
    b_pad = jnp.zeros((1, NC_PAD), jnp.float32).at[:, :NUM_CLASSES].set(b)
    return {"w_pad": w_pad, "b_pad": b_pad}


# ---------------------------------------------------------------------------
# ConfounderExplainer.forward
# ---------------------------------------------------------------------------
@functools.partial(jax.jit, static_argnames=("training",))
def confounder_explainer_forward(inputs, y, prepared, training=True):
    x = inputs[0]
    bsz = x.shape[0]
    x_flat = x.reshape(bsz, -1)
    # Pad batch to a full sublane tile (8); sliced back below.
    x_pad = jnp.pad(x_flat, ((0, B_PAD - bsz), (0, 0)))
    y_pad = jnp.pad(y.astype(jnp.int32), (0, B_PAD - bsz))

    preds_pad, maps_flat = pl.pallas_call(
        _fused_kernel,
        out_shape=(
            jax.ShapeDtypeStruct((B_PAD, NC_PAD), jnp.float32),
            jax.ShapeDtypeStruct((B_PAD, HW), jnp.float32),
        ),
        in_specs=[
            pl.BlockSpec(memory_space=pltpu.MemorySpace.VMEM),   # x_flat (8, 1024)
            pl.BlockSpec(memory_space=pltpu.MemorySpace.VMEM),   # weight (1024, 128) bf16
            pl.BlockSpec(memory_space=pltpu.MemorySpace.VMEM),   # bias   (1, 128)
            pl.BlockSpec(memory_space=pltpu.MemorySpace.SMEM),   # labels (8,) int32
        ],
        out_specs=(
            pl.BlockSpec(memory_space=pltpu.MemorySpace.VMEM),
            pl.BlockSpec(memory_space=pltpu.MemorySpace.VMEM),
        ),
    )(x_pad, prepared["w_pad"], prepared["b_pad"], y_pad)

    preds = preds_pad[:bsz, :NUM_CLASSES]
    if not training:
        return preds

    # Maps depend only on y and the spatial shape (x is zeroed), so compute
    # once and reuse the same array for every pathway.
    maps = maps_flat[:bsz].reshape(bsz, 1, H, W)
    result = [maps for _ in inputs]
    return result, preds


if __name__ == "__main__":
    key = jax.random.PRNGKey(0)
    kx, kw, ky = jax.random.split(key, 3)

    x = jax.random.normal(kx, (B, C, H, W), jnp.float32)
    y = jax.random.randint(ky, (B,), 0, NUM_CLASSES, dtype=jnp.int32)
    w = jax.random.normal(kw, (D, NUM_CLASSES), jnp.float32) * jnp.float32(0.02)
    b = jnp.zeros((1, NUM_CLASSES), jnp.float32)

    prepared = prepare_params(w, b)   # hoisted: padding/cast done once at init

    inputs = [x]  # list of pathway tensors, matching `for inp in inputs`
    result, preds = confounder_explainer_forward(inputs, y, prepared, training=True)

    preds = jax.block_until_ready(preds)
    result = [jax.block_until_ready(r) for r in result]

    assert preds.shape == (B, NUM_CLASSES)
    assert result[0].shape == (B, 1, H, W)
    # each map should contain exactly PATCH*PATCH ones (patch averaged over C)
    assert int(jnp.sum(result[0])) == B * PATCH * PATCH

    # reference for the linear head at matching precision (bf16 weight, f32 acc)
    ref_preds = jnp.dot(
        x.reshape(B, -1).astype(jnp.bfloat16),
        prepared["w_pad"][:, :NUM_CLASSES],
        preferred_element_type=jnp.float32,
    ) + b
    assert jnp.allclose(preds, ref_preds, atol=2e-3)

    # loose sanity check against the original full-f32 head
    ref_f32 = x.reshape(B, -1) @ w + b
    assert jnp.allclose(preds, ref_f32, atol=5e-2)

    print("KERNEL_OK")
</pallas_src>

<mosaic_0001>
module attributes {stable_mosaic.version = 11 : i64} {
  func.func @_fused_kernel(%arg0: memref<8x1024xf32, #tpu.memory_space<vmem>>, %arg1: memref<1024x128xbf16, #tpu.memory_space<vmem>>, %arg2: memref<1x128xf32, #tpu.memory_space<vmem>>, %arg3: memref<8xi32, #tpu.memory_space<smem>>, %arg4: memref<8x128xf32, #tpu.memory_space<vmem>>, %arg5: memref<8x256xf32, #tpu.memory_space<vmem>>) attributes {dimension_semantics = [], scalar_prefetch = 0 : i64, scratch_operands = 0 : i64, tpu.core_type = #tpu.core_type<tc>} {
    %c0 = arith.constant 0 : index
    %c0_0 = arith.constant 0 : index
    %0 = vector.load %arg0[%c0, %c0_0] : memref<8x1024xf32, #tpu.memory_space<vmem>>, vector<8x1024xf32>
    %1 = arith.truncf %0 : vector<8x1024xf32> to vector<8x1024xbf16>
    %c0_1 = arith.constant 0 : index
    %c0_2 = arith.constant 0 : index
    %2 = vector.load %arg1[%c0_1, %c0_2] : memref<1024x128xbf16, #tpu.memory_space<vmem>>, vector<1024x128xbf16>
    %cst = arith.constant dense<0.000000e+00> : vector<8x128xf32>
    %3 = tpu.matmul %1, %2, %cst {dimension_numbers = #tpu.dot_dimension_numbers<[1], [0], [0], [1], [0, 0, 1, 1], [], []>} : vector<8x1024xbf16>, vector<1024x128xbf16>, vector<8x128xf32> -> vector<8x128xf32>
    %c0_3 = arith.constant 0 : index
    %c0_4 = arith.constant 0 : index
    %4 = vector.load %arg2[%c0_3, %c0_4] : memref<1x128xf32, #tpu.memory_space<vmem>>, vector<1x128xf32>
    %5 = vector.broadcast %4 : vector<1x128xf32> to vector<8x128xf32>
    %6 = arith.addf %3, %5 : vector<8x128xf32>
    %c0_5 = arith.constant 0 : index
    %c0_6 = arith.constant 0 : index
    %7 = vector.load %arg4[%c0_5, %c0_6] : memref<8x128xf32, #tpu.memory_space<vmem>>, vector<8x128xf32>
    tpu.vector_store %arg4[%c0_5, %c0_6], %6 {strides = array<i32>} : memref<8x128xf32, #tpu.memory_space<vmem>>, vector<8x128xf32>,
    %8 = tpu.iota {dimensions = array<i32: 1>} : vector<8x256xi32>
    %c4_i32 = arith.constant 4 : i32
    %9 = vector.broadcast %c4_i32 : i32 to vector<8x256xi32>
    %10 = arith.shrsi %8, %9 : vector<8x256xi32>
    %c15_i32 = arith.constant 15 : i32
    %11 = vector.broadcast %c15_i32 : i32 to vector<8x256xi32>
    %12 = arith.andi %8, %11 : vector<8x256xi32>
    %13 = tpu.iota {dimensions = array<i32: 0>} : vector<8x256xi32>
    %c0_i32 = arith.constant 0 : i32
    %14 = vector.broadcast %c0_i32 : i32 to vector<8x256xi32>
    %c0_i32_7 = arith.constant 0 : i32
    %15 = vector.broadcast %c0_i32_7 : i32 to vector<8x256xi32>
    %16 = arith.cmpi eq, %13, %15 : vector<8x256xi32>
    %c0_8 = arith.constant 0 : index
    %17 = memref.load %arg3[%c0_8] : memref<8xi32, #tpu.memory_space<smem>>
    %18 = vector.broadcast %17 : i32 to vector<8x256xi32>
    %19 = arith.select %16, %18, %14 : vector<8x256xi1>, vector<8x256xi32>
    %c1_i32 = arith.constant 1 : i32
    %20 = vector.broadcast %c1_i32 : i32 to vector<8x256xi32>
    %21 = arith.cmpi eq, %13, %20 : vector<8x256xi32>
    %c1 = arith.constant 1 : index
    %22 = memref.load %arg3[%c1] : memref<8xi32, #tpu.memory_space<smem>>
    %23 = vector.broadcast %22 : i32 to vector<8x256xi32>
    %24 = arith.select %21, %23, %19 : vector<8x256xi1>, vector<8x256xi32>
    %c2_i32 = arith.constant 2 : i32
    %25 = vector.broadcast %c2_i32 : i32 to vector<8x256xi32>
    %26 = arith.cmpi eq, %13, %25 : vector<8x256xi32>
    %c2 = arith.constant 2 : index
    %27 = memref.load %arg3[%c2] : memref<8xi32, #tpu.memory_space<smem>>
    %28 = vector.broadcast %27 : i32 to vector<8x256xi32>
    %29 = arith.select %26, %28, %24 : vector<8x256xi1>, vector<8x256xi32>
    %c3_i32 = arith.constant 3 : i32
    %30 = vector.broadcast %c3_i32 : i32 to vector<8x256xi32>
    %31 = arith.cmpi eq, %13, %30 : vector<8x256xi32>
    %c3 = arith.constant 3 : index
    %32 = memref.load %arg3[%c3] : memref<8xi32, #tpu.memory_space<smem>>
    %33 = vector.broadcast %32 : i32 to vector<8x256xi32>
    %34 = arith.select %31, %33, %29 : vector<8x256xi1>, vector<8x256xi32>
    %c4_i32_9 = arith.constant 4 : i32
    %35 = vector.broadcast %c4_i32_9 : i32 to vector<8x256xi32>
    %36 = arith.cmpi eq, %13, %35 : vector<8x256xi32>
    %c4 = arith.constant 4 : index
    %37 = memref.load %arg3[%c4] : memref<8xi32, #tpu.memory_space<smem>>
    %38 = vector.broadcast %37 : i32 to vector<8x256xi32>
    %39 = arith.select %36, %38, %34 : vector<8x256xi1>, vector<8x256xi32>
    %c5_i32 = arith.constant 5 : i32
    %40 = vector.broadcast %c5_i32 : i32 to vector<8x256xi32>
    %41 = arith.cmpi eq, %13, %40 : vector<8x256xi32>
    %c5 = arith.constant 5 : index
    %42 = memref.load %arg3[%c5] : memref<8xi32, #tpu.memory_space<smem>>
    %43 = vector.broadcast %42 : i32 to vector<8x256xi32>
    %44 = arith.select %41, %43, %39 : vector<8x256xi1>, vector<8x256xi32>
    %c6_i32 = arith.constant 6 : i32
    %45 = vector.broadcast %c6_i32 : i32 to vector<8x256xi32>
    %46 = arith.cmpi eq, %13, %45 : vector<8x256xi32>
    %c6 = arith.constant 6 : index
    %47 = memref.load %arg3[%c6] : memref<8xi32, #tpu.memory_space<smem>>
    %48 = vector.broadcast %47 : i32 to vector<8x256xi32>
    %49 = arith.select %46, %48, %44 : vector<8x256xi1>, vector<8x256xi32>
    %c7_i32 = arith.constant 7 : i32
    %50 = vector.broadcast %c7_i32 : i32 to vector<8x256xi32>
    %51 = arith.cmpi eq, %13, %50 : vector<8x256xi32>
    %c7 = arith.constant 7 : index
    %52 = memref.load %arg3[%c7] : memref<8xi32, #tpu.memory_space<smem>>
    %53 = vector.broadcast %52 : i32 to vector<8x256xi32>
    %54 = arith.select %51, %53, %49 : vector<8x256xi1>, vector<8x256xi32>
    %c3_i32_10 = arith.constant 3 : i32
    %55 = vector.broadcast %c3_i32_10 : i32 to vector<8x256xi32>
    %56 = arith.andi %54, %55 : vector<8x256xi32>
    %c4_i32_11 = arith.constant 4 : i32
    %57 = vector.broadcast %c4_i32_11 : i32 to vector<8x256xi32>
    %58 = arith.muli %56, %57 : vector<8x256xi32>
    %c2_i32_12 = arith.constant 2 : i32
    %59 = vector.broadcast %c2_i32_12 : i32 to vector<8x256xi32>
    %60 = arith.shrsi %54, %59 : vector<8x256xi32>
    %c3_i32_13 = arith.constant 3 : i32
    %61 = vector.broadcast %c3_i32_13 : i32 to vector<8x256xi32>
    %62 = arith.andi %60, %61 : vector<8x256xi32>
    %c4_i32_14 = arith.constant 4 : i32
    %63 = vector.broadcast %c4_i32_14 : i32 to vector<8x256xi32>
    %64 = arith.muli %62, %63 : vector<8x256xi32>
    %65 = arith.cmpi sge, %10, %64 : vector<8x256xi32>
    %c4_i32_15 = arith.constant 4 : i32
    %66 = vector.broadcast %c4_i32_15 : i32 to vector<8x256xi32>
    %67 = arith.addi %64, %66 : vector<8x256xi32>
    %68 = arith.cmpi slt, %10, %67 : vector<8x256xi32>
    %69 = arith.andi %65, %68 : vector<8x256xi1>
    %70 = arith.cmpi sge, %12, %58 : vector<8x256xi32>
    %71 = arith.andi %69, %70 : vector<8x256xi1>
    %c4_i32_16 = arith.constant 4 : i32
    %72 = vector.broadcast %c4_i32_16 : i32 to vector<8x256xi32>
    %73 = arith.addi %58, %72 : vector<8x256xi32>
    %74 = arith.cmpi slt, %12, %73 : vector<8x256xi32>
    %75 = arith.andi %71, %74 : vector<8x256xi1>
    %76 = arith.extui %75 : vector<8x256xi1> to vector<8x256xi32>
    %77 = arith.sitofp %76 : vector<8x256xi32> to vector<8x256xf32>
    %c0_17 = arith.constant 0 : index
    %c0_18 = arith.constant 0 : index
    %78 = vector.load %arg5[%c0_17, %c0_18] : memref<8x256xf32, #tpu.memory_space<vmem>>, vector<8x256xf32>
    tpu.vector_store %arg5[%c0_17, %c0_18], %77 {strides = array<i32>} : memref<8x256xf32, #tpu.memory_space<vmem>>, vector<8x256xf32>,
    return
  }
}

</mosaic_0001>

<bundles_post_ra>
// kernel: confounder_explainer_forward.1
= control target key start
LH: loop header
LB: loop body
LE: loop exit
PB: predicated region body
PF: predicated region fallthrough
CT: control target
= control target key end

     0   :  { %11 = vsyncpa [#allocation3], 0  ;;  %s1176_s0 = inlined_call_operand.vmem [shape: f32[8,1024], index: 0, kind: input, shape index: {}]   ;;  %s1177_s1 = inlined_call_operand.hbm [shape: bf16[1024,128], index: 1, kind: input, shape index: {}]   ;;  %s1178_s2 = inlined_call_operand.vmem [shape: f32[1,128], index: 2, kind: input, shape index: {}]   ;;  %s1179_s3 = inlined_call_operand.vmem [shape: s32[8], index: 3, kind: input, shape index: {}]   ;;  %s1180_s4 = inlined_call_operand.vmem [shape: f32[8,128], index: 4, kind: output, shape index: {0}]   ;;  %s1181_s5 = inlined_call_operand.vmem [shape: f32[8,256], index: 5, kind: output, shape index: {1}]  }
   0x1   :  { %12 = vsyncpa [#allocation4], 0  ;;  %s1090_s18 = smov [#allocation2]   ;;  %s35_s22 = sshll.u32 %s1179_s3, 4  ;;  %s36_s22 = int_to_ptr.vmem [resolvable:$true] %s35_s22 }
   0x2   :  { %s20_s19 = sshll.u32 %s1090_s18, 4  ;;  %s1052_s25 = scalar_lea.hbm %s1177_s1, 8192  ;;  %s21_s19 = int_to_ptr.vmem [resolvable:$true] %s20_s19 }
   0x3   :  { %p1053_p0 = scmp.ne.s32.totalorder %s1177_s1, %s1052_s25  ;;  %p1056_p1 = scmp.lt.u32.totalorder %s1052_s25, %s1177_s1 }
   0x5   :  { %p1058_p2 = pnand %p1056_p1, %p1053_p0 }
   0x7   :  { %1061 = shalt.err (!%p1058_p2)
}
   0x8   :  { %s1062_s30 = scalar_lea.vmem %s21_s19, 8192  ;;  %p1067_p4 = scmp.lt.s32.totalorder %s21_s19, %s21_s19 }
   0x9   :  { %p1063_p3 = scmp.ne.s32.totalorder %s21_s19, %s1062_s30  ;;  %p1068_p5 = scmp.lt.s32.totalorder %s1062_s30, %s1062_s30 }
   0xb   :  { %p1069_p6 = por %p1068_p5, %p1067_p4 }
   0xd   :  { %p1070_p7 = pnand %p1069_p6, %p1063_p3 }
   0xf   :  { %1073 = shalt.err (!%p1070_p7)
}
  0x10   :  { %s1091_s3 = smov 64   ;;  %s1092_s6 = smov 4  }
  0x11   :  { %26 = dma.hbm_to_vmem [thread:$0]  %s1177_s1, 8192, %s21_s19, [#allocation3], %s1091_s3, %s1091_s3, %s1092_s6  }
  0x12   :  { %s1074_s9 = scalar_lea.vmem %s36_s22, 16  ;;  %p1079_p9 = scmp.lt.s32.totalorder %s36_s22, %s36_s22 }
  0x13   :  { %p1075_p8 = scmp.ne.s32.totalorder %s36_s22, %s1074_s9  ;;  %p1080_p10 = scmp.lt.s32.totalorder %s1074_s9, %s1074_s9 }
  0x15   :  { %p1081_p11 = por %p1080_p10, %p1079_p9 }
  0x17   :  { %p1082_p12 = pnand %p1081_p11, %p1075_p8 }
  0x19   :  { %1085 = shalt.err (!%p1082_p12)
}
  0x1a   :  { %s1093_s10 = smov [#allocation5]  }
  0x1b   :  { %38 = dma.vmem_to_smem %s36_s22, 16, %s1093_s10, [#allocation4]  }
  0x1c   :  { %1086 = dma.done.wait [#allocation3], 8192  }
  0x1d   :  { %1087 = vsyncadd [#allocation3], 4294959104 }
  0x1e   :  { %1088 = dma.done.wait [#allocation4], 16  }
  0x1f   :  { %1089 = vsyncadd [#allocation4], 4294967280 }
  0x20   :  { %45 = sfence }
  0x21   :  { %v988_v0 = vld [vmem:[#allocation2 + $0x40] sm:$0xff]   ;;  %v992_v4 = vld [vmem:[#allocation2 + $0x48] sm:$0xff]   ;;  %v996_v8 = vld [vmem:[#allocation2 + $0x50] sm:$0xff]   ;;  %s753_s26 = sld [smem:[#allocation5]]  ;;  %s886_s27 = sld [smem:[#allocation5 + $0x1]] }
  0x22   :  { %v989_v1 = vld [vmem:[#allocation2 + $0xc0] sm:$0xff]   ;;  %895 = vmatprep.subr.bf16.mxu0 %v988_v0  ;;  %v993_v5 = vld [vmem:[#allocation2 + $0xc8] sm:$0xff]   ;;  %v997_v9 = vld [vmem:[#allocation2 + $0xd0] sm:$0xff]   ;;  %s887_s28 = sld [smem:[#allocation5 + $0x2]]  ;;  %s888_s29 = sld [smem:[#allocation5 + $0x3]] }
  0x23   :  { %v990_v2 = vld [vmem:[#allocation2] sm:$0xff]   ;;  %917 = vmatprep.subr.bf16.mxu1 %v989_v1  ;;  %v994_v6 = vld [vmem:[#allocation2 + $0x8] sm:$0xff]   ;;  %v998_v10 = vld [vmem:[#allocation2 + $0x10] sm:$0xff]   ;;  %s889_s30 = sld [smem:[#allocation5 + $0x4]]  ;;  %s890_s3 = sld [smem:[#allocation5 + $0x5]] }
  0x24   :  { %v991_v3 = vld [vmem:[#allocation2 + $0x80] sm:$0xff]   ;;  %896 = vmatpush3.bf16.msra.mxu0 %v990_v2  ;;  %v995_v7 = vld [vmem:[#allocation2 + $0x88] sm:$0xff]   ;;  %v999_v11 = vld [vmem:[#allocation2 + $0x90] sm:$0xff]   ;;  %s891_s6 = sld [smem:[#allocation5 + $0x6]] }
  0x25   :  { %918 = vmatpush3.bf16.msra.mxu1 %v991_v3  ;;  %897 = vmatprep.subr.bf16.mxu0 %v992_v4  ;;  %v1000_v12 = vld [vmem:[#allocation2 + $0x58] sm:$0xff]   ;;  %v1004_v16 = vld [vmem:[#allocation2 + $0x60] sm:$0xff]   ;;  %v1008_v20 = vld [vmem:[#allocation2 + $0x68] sm:$0xff]  }
  0x26   :  { %919 = vmatprep.subr.bf16.mxu1 %v993_v5  ;;  %v1001_v13 = vld [vmem:[#allocation2 + $0xd8] sm:$0xff]   ;;  %v1005_v17 = vld [vmem:[#allocation2 + $0xe0] sm:$0xff]   ;;  %v1009_v21 = vld [vmem:[#allocation2 + $0xe8] sm:$0xff]  }
  0x27   :  { %v1002_v14 = vld [vmem:[#allocation2 + $0x18] sm:$0xff]   ;;  %v1006_v18 = vld [vmem:[#allocation2 + $0x20] sm:$0xff]   ;;  %v1010_v22 = vld [vmem:[#allocation2 + $0x28] sm:$0xff]  }
  0x28   :  { %898 = vmatpush3.bf16.msra.mxu0 %v994_v6  ;;  %v1003_v15 = vld [vmem:[#allocation2 + $0x98] sm:$0xff]   ;;  %v1007_v19 = vld [vmem:[#allocation2 + $0xa0] sm:$0xff]   ;;  %v1011_v23 = vld [vmem:[#allocation2 + $0xa8] sm:$0xff]  }
  0x29   :  { %920 = vmatpush3.bf16.msra.mxu1 %v995_v7  ;;  %899 = vmatprep.subr.bf16.mxu0 %v996_v8  ;;  %v1012_v24 = vld [vmem:[#allocation2 + $0x70] sm:$0xff]   ;;  %v1016_v28 = vld [vmem:[#allocation2 + $0x78] sm:$0xff]   ;;  %v48_v32 = vld [vmem:[%s1176_s0 + $0x8] sm:$0xff] }
  0x2a   :  { %921 = vmatprep.subr.bf16.mxu1 %v997_v9  ;;  %v1013_v25 = vld [vmem:[#allocation2 + $0xf0] sm:$0xff]   ;;  %v1017_v29 = vld [vmem:[#allocation2 + $0xf8] sm:$0xff]   ;;  %v47_v34 = vld [vmem:[%s1176_s0] sm:$0xff]  ;;  %v56_v35 = vpack.c.bf16 %v48_v32, %v48_v32 }
  0x2b   :  { %v1014_v26 = vld [vmem:[#allocation2 + $0x30] sm:$0xff]   ;;  %v1018_v30 = vld [vmem:[#allocation2 + $0x38] sm:$0xff]   ;;  %v55_v37 = vpack.c.bf16 %v47_v34, %v47_v34  ;;  %v1020_v40 = vld [vmem:[#allocation2 + $0x140] sm:$0xff]  }
  0x2c   :  { %900 = vmatpush3.bf16.msra.mxu0 %v998_v10  ;;  %v1015_v27 = vld [vmem:[#allocation2 + $0xb0] sm:$0xff]   ;;  %v1019_v31 = vld [vmem:[#allocation2 + $0xb8] sm:$0xff]   ;;  %614 = vmatprep.mubr.bf16.mxu0 %v56_v35  ;;  %v1021_v41 = vld [vmem:[#allocation2 + $0x1c0] sm:$0xff]  }
  0x2d   :  { %922 = vmatpush3.bf16.msra.mxu1 %v999_v11  ;;  %901 = vmatprep.subr.bf16.mxu0 %v1000_v12  ;;  %v50_v33 = vld [vmem:[%s1176_s0 + $0x18] sm:$0xff]  ;;  %v49_v38 = vld [vmem:[%s1176_s0 + $0x10] sm:$0xff]  ;;  %v1022_v42 = vld [vmem:[#allocation2 + $0x100] sm:$0xff]  }
  0x2e   :  { %923 = vmatprep.subr.bf16.mxu1 %v1001_v13  ;;  %v58_v36 = vpack.c.bf16 %v50_v33, %v50_v33  ;;  %v57_v39 = vpack.c.bf16 %v49_v38, %v49_v38  ;;  %v1023_v43 = vld [vmem:[#allocation2 + $0x180] sm:$0xff]   ;;  %v1024_v44 = vld [vmem:[#allocation2 + $0x148] sm:$0xff]   ;;  %v1028_v48 = vld [vmem:[#allocation2 + $0x150] sm:$0xff]  }
  0x2f   :  { %v1025_v45 = vld [vmem:[#allocation2 + $0x1c8] sm:$0xff]   ;;  %v1029_v49 = vld [vmem:[#allocation2 + $0x1d0] sm:$0xff]   ;;  %v1032_v52 = vld [vmem:[#allocation2 + $0x158] sm:$0xff]  }
  0x30   :  { %902 = vmatpush3.bf16.msra.mxu0 %v1002_v14  ;;  %654 = vmatprep.mubr.bf16.mxu1 %v58_v36  ;;  %v1026_v46 = vld [vmem:[#allocation2 + $0x108] sm:$0xff]   ;;  %v1030_v50 = vld [vmem:[#allocation2 + $0x110] sm:$0xff]   ;;  %v1033_v53 = vld [vmem:[#allocation2 + $0x1d8] sm:$0xff]  }
  0x31   :  { %924 = vmatpush3.bf16.msra.mxu1 %v1003_v15  ;;  %903 = vmatprep.subr.bf16.mxu0 %v1004_v16  ;;  %v1027_v47 = vld [vmem:[#allocation2 + $0x188] sm:$0xff]   ;;  %v1031_v51 = vld [vmem:[#allocation2 + $0x190] sm:$0xff]   ;;  %v1034_v54 = vld [vmem:[#allocation2 + $0x118] sm:$0xff]   ;;  %v743_v16 = vlaneseq }
  0x32   :  { %925 = vmatprep.subr.bf16.mxu1 %v1005_v17  ;;  %v1035_v55 = vld [vmem:[#allocation2 + $0x198] sm:$0xff]   ;;  %v1036_v56 = vld [vmem:[#allocation2 + $0x160] sm:$0xff]   ;;  %v1040_v60 = vld [vmem:[#allocation2 + $0x168] sm:$0xff]  }
  0x33   :  { %v1037_v57 = vld [vmem:[#allocation2 + $0x1e0] sm:$0xff]   ;;  %v1041_v61 = vld [vmem:[#allocation2 + $0x1e8] sm:$0xff]   ;;  %v1044_v0 = vld [vmem:[#allocation2 + $0x170] sm:$0xff]   ;;  %v751_v17 = vshrl.u32 %v743_v16, 7  ;;  %v744_v35 = vand.u32 127, %v743_v16 }
  0x34   :  { %904 = vmatpush3.bf16.msra.mxu0 %v1006_v18  ;;  %v1038_v58 = vld [vmem:[#allocation2 + $0x120] sm:$0xff]   ;;  %v1042_v62 = vld [vmem:[#allocation2 + $0x128] sm:$0xff]   ;;  %v1045_v1 = vld [vmem:[#allocation2 + $0x1f0] sm:$0xff]   ;;  %v754_v18 = vstv %s753_s26 }
  0x35   :  { %926 = vmatpush3.bf16.msra.mxu1 %v1007_v19  ;;  %905 = vmatprep.subr.bf16.mxu0 %v1008_v20  ;;  %v1039_v59 = vld [vmem:[#allocation2 + $0x1a0] sm:$0xff]   ;;  %v1043_v63 = vld [vmem:[#allocation2 + $0x1a8] sm:$0xff]   ;;  %v1046_v2 = vld [vmem:[#allocation2 + $0x130] sm:$0xff]   ;;  %vm752_vm0 = vcmp.eq.s32.totalorder %v751_v17, 0  ;;  %vm756_vm1 = vcmp.eq.s32.totalorder %v751_v17, 1  ;;  %v758_v20 = vstv %s886_s27  ;;  %vm760_vm2 = vcmp.eq.s32.totalorder %v751_v17, 2 }
  0x36   :  { %927 = vmatprep.subr.bf16.mxu1 %v1009_v21  ;;  %v1047_v3 = vld [vmem:[#allocation2 + $0x1b0] sm:$0xff]   ;;  %v1048_v4 = vld [vmem:[#allocation2 + $0x178] sm:$0xff]   ;;  %v52_v8 = vld [vmem:[%s1176_s0 + $0x28] sm:$0xff]  ;;  %v755_v19 = vsel %vm752_vm0, %v754_v18, 0  ;;  %vm764_vm3 = vcmp.eq.s32.totalorder %v751_v17, 3  ;;  %vm768_vm4 = vcmp.eq.s32.totalorder %v751_v17, 4 }
  0x37   :  { %v1049_v5 = vld [vmem:[#allocation2 + $0x1f8] sm:$0xff]   ;;  %v60_v10 = vpack.c.bf16 %v52_v8, %v52_v8  ;;  %v51_v12 = vld [vmem:[%s1176_s0 + $0x20] sm:$0xff]  ;;  %v53_v13 = vld [vmem:[%s1176_s0 + $0x30] sm:$0xff]  ;;  %v759_v21 = vsel %vm756_vm1, %v758_v20, %v755_v19  ;;  %vm772_vm5 = vcmp.eq.s32.totalorder %v751_v17, 5  ;;  %vm776_vm6 = vcmp.eq.s32.totalorder %v751_v17, 6 }
  0x38   :  { %906 = vmatpush3.bf16.msra.mxu0 %v1010_v22  ;;  %v1050_v6 = vld [vmem:[#allocation2 + $0x138] sm:$0xff]   ;;  %v59_v14 = vpack.c.bf16 %v51_v12, %v51_v12  ;;  %v61_v15 = vpack.c.bf16 %v53_v13, %v53_v13  ;;  %v762_v22 = vstv %s887_s28  ;;  %vm780_vm7 = vcmp.eq.s32.totalorder %v751_v17, 7 }
  0x39   :  { %928 = vmatpush3.bf16.msra.mxu1 %v1011_v23  ;;  %907 = vmatprep.subr.bf16.mxu0 %v1012_v24  ;;  %v1051_v7 = vld [vmem:[#allocation2 + $0x1b8] sm:$0xff]   ;;  %v763_v23 = vsel %vm760_vm2, %v762_v22, %v759_v21  ;;  %v766_v24 = vstv %s888_s29 }
  0x3a   :  { %929 = vmatprep.subr.bf16.mxu1 %v1013_v25  ;;  %v54_v9 = vld [vmem:[%s1176_s0 + $0x38] sm:$0xff]  ;;  %s892_s0 = sld [smem:[#allocation5 + $0x7]]  ;;  %v767_v25 = vsel %vm764_vm3, %v766_v24, %v763_v23 }
  0x3b   :  { %v62_v11 = vpack.c.bf16 %v54_v9, %v54_v9 }
  0x3c   :  { %908 = vmatpush3.bf16.msra.mxu0 %v1014_v26  ;;  %v770_v26 = vstv %s889_s30 }
  0x3d   :  { %930 = vmatpush3.bf16.msra.mxu1 %v1015_v27  ;;  %909 = vmatprep.subr.bf16.mxu0 %v1016_v28  ;;  %v771_v27 = vsel %vm768_vm4, %v770_v26, %v767_v25  ;;  %v774_v28 = vstv %s890_s3 }
  0x3e   :  { %931 = vmatprep.subr.bf16.mxu1 %v1017_v29  ;;  %v775_v29 = vsel %vm772_vm5, %v774_v28, %v771_v27 }
  0x40   :  { %910 = vmatpush3.bf16.msra.mxu0 %v1018_v30  ;;  %v778_v30 = vstv %s891_s6  ;;  %v782_v32 = vstv %s892_s0 }
  0x41   :  { %932 = vmatpush3.bf16.msra.mxu1 %v1019_v31  ;;  %939 = vmatprep.subr.bf16.mxu0 %v1020_v40  ;;  %v779_v31 = vsel %vm776_vm6, %v778_v30, %v775_v29  ;;  %v746_v40 = vshra.s32 %v744_v35, 4 }
  0x42   :  { %961 = vmatprep.subr.bf16.mxu1 %v1021_v41  ;;  %v783_v33 = vsel %vm780_vm7, %v782_v32, %v779_v31 }
  0x43   :  { %615 = vmatmul.mubr.bf16.vlgmr.msra.gmra.mrb[0].mxu0 %v55_v37  ;;  %v786_v34 = vshra.s32 %v783_v33, 2  ;;  %v745_v37 = vadd.s32 128, %v744_v35  ;;  %v784_v38 = vand.u32 3, %v783_v33 }
  0x44   :  { %655 = vmatmul.mubr.bf16.vlgmr.msra.gmra.mrb[0].mxu1 %v57_v39  ;;  %940 = vmatpush3.bf16.msra.mxu0 %v1022_v42 }
  0x45   :  { %962 = vmatpush3.bf16.msra.mxu1 %v1023_v43  ;;  %941 = vmatprep.subr.bf16.mxu0 %v1024_v44  ;;  %v787_v36 = vand.u32 3, %v786_v34  ;;  %v747_v41 = vshra.s32 %v745_v37, 4  ;;  %v785_v42 = vmul.u32 4, %v784_v38  ;;  %v748_v44 = vand.u32 15, %v744_v35 }
  0x46   :  { %963 = vmatprep.subr.bf16.mxu1 %v1025_v45  ;;  %694 = vmatprep.mubr.bf16.mxu0 %v60_v10  ;;  %v749_v45 = vand.u32 15, %v745_v37 }
  0x47   :  { %734 = vmatprep.mubr.bf16.mxu1 %v62_v11  ;;  %v788_v39 = vmul.u32 4, %v787_v36  ;;  %vm796_vm13 = vcmp.ge.s32.totalorder %v748_v44, %v785_v42 }
  0x48   :  { %942 = vmatpush3.bf16.msra.mxu0 %v1026_v46  ;;  %vm797_vm14 = vcmp.ge.s32.totalorder %v749_v45, %v785_v42  ;;  %v800_v46 = vadd.s32 4, %v785_v42 }
  0x49   :  { %964 = vmatpush3.bf16.msra.mxu1 %v1027_v47  ;;  %943 = vmatprep.subr.bf16.mxu0 %v1028_v48  ;;  %v791_v43 = vadd.s32 4, %v788_v39  ;;  %vm789_vm8 = vcmp.ge.s32.totalorder %v746_v40, %v788_v39  ;;  %vm790_vm9 = vcmp.ge.s32.totalorder %v747_v41, %v788_v39  ;;  %v1094_v47 = vmov 0.0  }
  0x4a   :  { %965 = vmatprep.subr.bf16.mxu1 %v1029_v49  ;;  %vm801_vm1 = vcmp.lt.s32.totalorder %v748_v44, %v800_v46  ;;  %vm802_vm2 = vcmp.lt.s32.totalorder %v749_v45, %v800_v46 }
  0x4b   :  { %vm792_vm10 = vcmp.lt.s32.totalorder %v746_v40, %v791_v43  ;;  %vm793_vm11 = vcmp.lt.s32.totalorder %v747_v41, %v791_v43 }
  0x4c   :  { %944 = vmatpush3.bf16.msra.mxu0 %v1030_v50  ;;  %vm794_vm12 = vmand %vm789_vm8, %vm792_vm10 }
  0x4d   :  { %966 = vmatpush3.bf16.msra.mxu1 %v1031_v51  ;;  %945 = vmatprep.subr.bf16.mxu0 %v1032_v52  ;;  %vm795_vm15 = vmand %vm790_vm9, %vm793_vm11  ;;  %v821_v52 = vld [vmem:[%s1178_s2] ss:$0 sm:$0xff] }
  0x4e   :  { %967 = vmatprep.subr.bf16.mxu1 %v1033_v53  ;;  %vm798_vm0 = vmand %vm794_vm12, %vm796_vm13 }
  0x4f   :  { %vm799_vm3 = vmand %vm795_vm15, %vm797_vm14 }
  0x50   :  { %946 = vmatpush3.bf16.msra.mxu0 %v1034_v54  ;;  %vm803_vm4 = vmand %vm798_vm0, %vm801_vm1 }
  0x51   :  { %968 = vmatpush3.bf16.msra.mxu1 %v1035_v55  ;;  %947 = vmatprep.subr.bf16.mxu0 %v1036_v56  ;;  %vm804_vm5 = vmand %vm799_vm3, %vm802_vm2  ;;  %v893_v48 = vsel %vm803_vm4, 1.0, %v1094_v47 }
  0x52   :  { %969 = vmatprep.subr.bf16.mxu1 %v1037_v57  ;;  %v894_v49 = vsel %vm804_vm5, 1.0, %v1094_v47  ;;  %809 = vst [vmem:[%s1181_s5] sm:$0xff] %v893_v48 }
  0x53   :  { %810 = vst [vmem:[%s1181_s5 + $0x8] sm:$0xff] %v894_v49 }
  0x54   :  { %948 = vmatpush3.bf16.msra.mxu0 %v1038_v58 }
  0x55   :  { %970 = vmatpush3.bf16.msra.mxu1 %v1039_v59  ;;  %949 = vmatprep.subr.bf16.mxu0 %v1040_v60 }
  0x56   :  { %971 = vmatprep.subr.bf16.mxu1 %v1041_v61 }
  0x58   :  { %950 = vmatpush3.bf16.msra.mxu0 %v1042_v62 }
  0x59   :  { %972 = vmatpush3.bf16.msra.mxu1 %v1043_v63  ;;  %951 = vmatprep.subr.bf16.mxu0 %v1044_v0 }
  0x5a   :  { %973 = vmatprep.subr.bf16.mxu1 %v1045_v1 }
  0x5c   :  { %952 = vmatpush3.bf16.msra.mxu0 %v1046_v2 }
  0x5d   :  { %974 = vmatpush3.bf16.msra.mxu1 %v1047_v3  ;;  %953 = vmatprep.subr.bf16.mxu0 %v1048_v4 }
  0x5e   :  { %975 = vmatprep.subr.bf16.mxu1 %v1049_v5 }
  0x60   :  { %954 = vmatpush3.bf16.msra.mxu0 %v1050_v6 }
  0x61   :  { %976 = vmatpush3.bf16.msra.mxu1 %v1051_v7 }
  0x63   :  { %695 = vmatmul.mubr.bf16.vlgmr.msra.gmra.mrb[4].mxu0 %v59_v14 }
  0x64   :  { %735 = vmatmul.mubr.bf16.vlgmr.msra.gmra.mrb[4].mxu1 %v61_v15 }
 0x116   :  { %v911_v50 = vpop.f32.mrb[0].mxu0 }
 0x117   :  { %v933_v51 = vpop.f32.mrb[0].mxu1  ;;  %v912_v53 = vpop.f32.mrb[1].mxu0 }
 0x118   :  { %v934_v54 = vpop.f32.mrb[1].mxu1  ;;  %v913_v55 = vadd.f32 %v912_v53, %v911_v50  ;;  %v914_v57 = vpop.f32.mrb[2].mxu0 }
 0x119   :  { %v935_v56 = vadd.f32 %v934_v54, %v933_v51  ;;  %v936_v58 = vpop.f32.mrb[2].mxu1  ;;  %v915_v59 = vpop.f32.mrb[3].mxu0 }
 0x11a   :  { %v937_v60 = vpop.f32.mrb[3].mxu1  ;;  %v617_v61 = vadd.f32 %v913_v55, %v821_v52 }
 0x11c   :  { %v657_v62 = vadd.f32 %v935_v56, %v617_v61 }
 0x136   :  { %v955_v63 = vpop.f32.mrb[4].mxu0 }
 0x137   :  { %v977_v0 = vpop.f32.mrb[4].mxu1  ;;  %v956_v1 = vpop.f32.mrb[5].mxu0 }
 0x138   :  { %v957_v2 = vadd.f32 %v956_v1, %v955_v63  ;;  %v978_v3 = vpop.f32.mrb[5].mxu1  ;;  %v958_v4 = vpop.f32.mrb[6].mxu0 }
 0x139   :  { %v979_v5 = vadd.f32 %v978_v3, %v977_v0  ;;  %v980_v6 = vpop.f32.mrb[6].mxu1  ;;  %v959_v7 = vpop.f32.mrb[7].mxu0 }
 0x13a   :  { %v697_v8 = vadd.f32 %v957_v2, %v657_v62  ;;  %v981_v9 = vpop.f32.mrb[7].mxu1 }
 0x13c   :  { %v737_v10 = vadd.f32 %v979_v5, %v697_v8 }
 0x13e   :  { %742 = vst [vmem:[%s1180_s4] sm:$0xff] %v737_v10 }
 0x13f   :  { %819 = vsyncpa [#allocation3], 1 }
 0x140   :  { %820 = vsyncpa [#allocation4], 1 }

</bundles_post_ra>
